<compile_context>
chip_gen: v6e
topology: v6e:2x2x1
jax: 0.10.0
libtpu: 0.0.40
codegen_flags: <defaults>
</compile_context>

<pallas_src>
import functools
from typing import NamedTuple

import jax
import jax.numpy as jnp
from jax.experimental import pallas as pl
from jax.experimental.pallas import tpu as pltpu


class SIMeta(NamedTuple):
    """Static (hashable) packing metadata, passed as a static jit argument."""
    ranks: tuple          # sorted rank keys
    dims: tuple           # per-rank (K, L, M)
    out_offsets: tuple    # column offset of each rank inside the packed output
    has_bias: bool
    n_in_cols: int        # packed contraction width (ranks + bias col + zero pad)
    n_out_cols: int       # packed output width sum_r(M_r * L_r)


@functools.lru_cache(maxsize=1)
def _num_tensorcores():
    """Best-effort TensorCore count (v5e/v6e: 1, v7x: 2); safe fallback is 1."""
    try:
        info = pltpu.get_tpu_info()
        for name in ("num_cores", "core_count", "num_tensorcores", "tensor_core_count"):
            v = getattr(info, name, None)
            if v:
                return int(v)
    except Exception:
        pass
    return 1


@functools.lru_cache(maxsize=1)
def _vmem_physical_bytes():
    """Best-effort physical VMEM; default to the most restrictive chip (v7x, 64 MiB)."""
    try:
        vb = getattr(pltpu.get_tpu_info(), "vmem_capacity_bytes", None)
        if vb:
            return int(vb)
    except Exception:
        pass
    return 64 * 1024 * 1024


def _choose_tile_n(n_rows, row_align, bytes_per_row, weight_bytes, n_tc,
                   vmem_budget=12 * 1024 * 1024):
    """Largest row tile that fits the VMEM budget.

    Budget model: double-buffered x/out row blocks + (conservatively) double-buffered
    weight block.  Prefers an exact divisor of n_rows; only splits into >=2 grid steps
    on multi-TC chips when each step still gets >= 512 rows.  n_rows is already padded
    to a multiple of row_align by the caller.
    """
    avail = vmem_budget - 2 * weight_bytes
    if avail < 2 * row_align * bytes_per_row:
        return min(n_rows, row_align)
    max_rows = (avail // (2 * bytes_per_row)) // row_align * row_align
    max_rows = max(row_align, max_rows)

    if n_rows <= max_rows:
        tile = n_rows
    else:
        divisors = [t for t in range(row_align, max_rows + 1, row_align)
                    if n_rows % t == 0]
        tile = max(divisors) if divisors else max_rows  # ragged last block is masked

    if n_tc >= 2 and n_rows // tile < 2:
        # Give the second TensorCore work only when each step keeps >= 512 rows.
        half = (n_rows // 2) // row_align * row_align
        if half >= 512:
            divs = [t for t in range(row_align, half + 1, row_align)
                    if n_rows % t == 0 and t >= 512]
            tile = max(divs) if divs else tile
    return int(tile)


def _si_kernel(x_ref, w_ref, o_ref):
    # One lane-dense MXU pass per row tile: [tile_n, Cin] @ [Cin, Cout] with f32
    # accumulation; the bias is folded into the weight via the ones column in x.
    o_ref[...] = jnp.dot(x_ref[...], w_ref[...],
                         preferred_element_type=jnp.float32).astype(o_ref.dtype)


def pack_self_interaction_params(weights, bias, ls, compute_dtype=jnp.float32):
    """Build the packed block-diagonal weight ONCE, outside the jitted forward.

    Per-rank block: kron(W_r.T, I_{L_r}) of shape [K_r*L_r, M_r*L_r] (lets the kernel
    contract without transposing activations).  Blocks are laid out block-diagonally;
    if a bias exists, an extra row carries the rank-0 bias (matched by a ones column
    in the packed activations).  The contraction dim is zero-padded to a multiple of 8.
    """
    ranks = tuple(sorted(weights.keys()))
    dims, in_offsets, out_offsets, blocks = [], [], [], []
    in_off = out_off = 0
    for r in ranks:
        W = jnp.asarray(weights[r], dtype=jnp.float32)           # [M, K]
        M, K = W.shape
        L = int(ls[r])
        eye = jnp.eye(L, dtype=jnp.float32)
        blk = (W.T[:, None, :, None] * eye[None, :, None, :]).reshape(K * L, M * L)
        blocks.append(blk)
        dims.append((K, L, M))
        in_offsets.append(in_off)
        out_offsets.append(out_off)
        in_off += K * L
        out_off += M * L
    sum_in, sum_out = in_off, out_off

    has_bias = (bias is not None) and (0 in ranks)
    n_in_raw = sum_in + (1 if has_bias else 0)
    n_in_cols = -(-n_in_raw // 8) * 8                            # pad contraction dim

    w_packed = jnp.zeros((n_in_cols, sum_out), dtype=jnp.float32)
    for blk, io, oo in zip(blocks, in_offsets, out_offsets):
        w_packed = w_packed.at[io:io + blk.shape[0], oo:oo + blk.shape[1]].set(blk)
    if has_bias:
        i0 = ranks.index(0)
        _, L0, M0 = dims[i0]
        brow = jnp.broadcast_to(jnp.asarray(bias, jnp.float32).reshape(M0, 1),
                                (M0, L0)).reshape(M0 * L0)
        w_packed = w_packed.at[sum_in,
                               out_offsets[i0]:out_offsets[i0] + M0 * L0].set(brow)
    w_packed = w_packed.astype(compute_dtype)

    meta = SIMeta(ranks=ranks, dims=tuple(dims), out_offsets=tuple(out_offsets),
                  has_bias=bool(has_bias), n_in_cols=int(n_in_cols),
                  n_out_cols=int(sum_out))
    return w_packed, meta


def self_interaction_forward(in_dict, w_packed, meta, rbf=None, rij=None,
                             *, out_dtype=None):
    """Forward pass matching SelfInteraction.forward, fused into one pallas_call.

    `w_packed`/`meta` come from pack_self_interaction_params (built once, outside jit).
    Activations are used in whatever dtype the producer supplies (no in-wrapper cast);
    output dtype defaults to the input dtype.
    """
    ranks = meta.ranks
    x0 = in_dict[ranks[0]]
    I, J = x0.shape[:2]
    N = I * J
    in_dtype = x0.dtype
    out_dtype = in_dtype if out_dtype is None else out_dtype

    # --- pack activations: merge (K,L) per rank, concat along lanes, bias ones col.
    parts, cols = [], 0
    for (K, L, M), r in zip(meta.dims, ranks):
        x = in_dict[r]
        assert x.shape == (I, J, K, L), (r, x.shape, (I, J, K, L))
        parts.append(x.reshape(N, K * L))
        cols += K * L
    if meta.has_bias:
        parts.append(jnp.ones((N, 1), dtype=in_dtype))
        cols += 1
    pad_cols = meta.n_in_cols - cols
    if pad_cols:
        parts.append(jnp.zeros((N, pad_cols), dtype=in_dtype))
    x_packed = parts[0] if len(parts) == 1 else jnp.concatenate(parts, axis=1)
    # TODO(synk): ideally the upstream producer emits this packed [N, Cin] layout
    # directly so the concat does not cost an extra HBM pass.

    # --- row padding so the (8,128) block rule always holds (16 rows for packed bf16).
    row_align = 16 if jnp.dtype(in_dtype).itemsize < 4 else 8
    n_pad_rows = -(-N // row_align) * row_align
    if n_pad_rows != N:
        x_packed = jnp.pad(x_packed, ((0, n_pad_rows - N), (0, 0)))

    # --- VMEM-budgeted row tile.
    row_bytes = (meta.n_in_cols * jnp.dtype(in_dtype).itemsize
                 + meta.n_out_cols * jnp.dtype(out_dtype).itemsize)
    weight_bytes = meta.n_in_cols * meta.n_out_cols * jnp.dtype(w_packed.dtype).itemsize
    tile_n = _choose_tile_n(n_pad_rows, row_align, row_bytes, weight_bytes,
                            _num_tensorcores())
    grid = (pl.cdiv(n_pad_rows, tile_n),)

    params = dict(dimension_semantics=("parallel",))
    required = 2 * tile_n * row_bytes + 2 * weight_bytes
    if required > 14 * 1024 * 1024:
        # TODO(synk): for very large packed weights (big K/M/L, esp. on v7x's 64 MiB
        # VMEM) fall back to per-rank weight operands instead of one block-diag matmul.
        params["vmem_limit_bytes"] = min(int(required * 1.25) + (2 << 20),
                                         int(0.9 * _vmem_physical_bytes()))
    compiler_params = pltpu.CompilerParams(**params)

    out2 = pl.pallas_call(
        _si_kernel,
        out_shape=jax.ShapeDtypeStruct((n_pad_rows, meta.n_out_cols), out_dtype),
        grid=grid,
        in_specs=[
            pl.BlockSpec((tile_n, meta.n_in_cols), lambda i: (i, 0)),
            pl.BlockSpec((meta.n_in_cols, meta.n_out_cols), lambda i: (0, 0)),
        ],
        out_specs=pl.BlockSpec((tile_n, meta.n_out_cols), lambda i: (i, 0)),
        compiler_params=compiler_params,
    )(x_packed, w_packed)

    if n_pad_rows != N:
        out2 = out2[:N]

    out_dict = {}
    for (K, L, M), r, oo in zip(meta.dims, ranks, meta.out_offsets):
        out_dict[r] = out2[:, oo:oo + M * L].reshape(I, J, M, L)
    return out_dict, rbf, rij


def _xavier_normal(key, shape, dtype=jnp.float32):
    fan_out, fan_in = shape
    std = (2.0 / (fan_in + fan_out)) ** 0.5
    return std * jax.random.normal(key, shape, dtype)


if __name__ == "__main__":
    key = jax.random.PRNGKey(0)

    # Small, module-consistent shapes.
    channels_in = {0: 16, 1: 16}
    channels_out = {0: 24, 1: 24}
    I, J = 2, 8                                  # 'i', 'j' axes of the einsum
    dtype = jnp.float32

    keys = jax.random.split(key, 2 + len(channels_in))
    weights = {}
    for idx, rank in enumerate(sorted(channels_in.keys())):
        weights[rank] = _xavier_normal(
            keys[idx], (channels_out[rank], channels_in[rank]), dtype)
    # Non-zero bias (module allows a custom b_init) so the bias path is exercised.
    bias = 0.1 * jax.random.normal(keys[-2], (channels_out[0], 1), dtype)

    # Inputs: in_dict[rank] has shape [I, J, channels_in[rank], 2*rank+1].
    in_dict = {}
    for rank in sorted(channels_in.keys()):
        k_in = jax.random.fold_in(keys[-1], rank)
        in_dict[rank] = jax.random.normal(
            k_in, (I, J, channels_in[rank], 2 * rank + 1), dtype)
    ls = {r: in_dict[r].shape[-1] for r in in_dict}

    # Pack weights (+ bias) ONCE outside the jitted forward.
    w_packed, meta = pack_self_interaction_params(weights, bias, ls,
                                                  compute_dtype=jnp.float32)

    fwd = jax.jit(self_interaction_forward, static_argnums=(2,))
    out_dict, rbf, rij = fwd(in_dict, w_packed, meta)
    jax.block_until_ready(out_dict)

    # f32 correctness check against a pure-JAX einsum reference.
    for rank in sorted(channels_in.keys()):
        ref = jnp.einsum('ijkl,mk->ijml', in_dict[rank], weights[rank])
        if rank == 0:
            ref = ref + bias
        assert out_dict[rank].shape == ref.shape, (out_dict[rank].shape, ref.shape)
        assert jnp.allclose(out_dict[rank], ref, atol=1e-5, rtol=1e-5), rank

    # bf16 fast path: the *producer* supplies bf16 activations (no in-wrapper cast),
    # weights pre-packed in bf16 once, bf16 output halves the store stream.
    in_bf16 = {r: v.astype(jnp.bfloat16) for r, v in in_dict.items()}  # stand-in for an upstream bf16 producer
    w_bf16, meta_bf16 = pack_self_interaction_params(weights, bias, ls,
                                                     compute_dtype=jnp.bfloat16)
    out_bf16, _, _ = fwd(in_bf16, w_bf16, meta_bf16)
    jax.block_until_ready(out_bf16)
    for rank in sorted(channels_in.keys()):
        ref = jnp.einsum('ijkl,mk->ijml', in_dict[rank], weights[rank])
        if rank == 0:
            ref = ref + bias
        assert jnp.allclose(out_bf16[rank].astype(jnp.float32), ref,
                            atol=1e-1, rtol=1e-1), rank

    print("KERNEL_OK")
</pallas_src>

<mosaic_0001>
module attributes {stable_mosaic.version = 11 : i64} {
  func.func @_si_kernel(%arg0: i32, %arg1: memref<16x72xf32, #tpu.memory_space<vmem>>, %arg2: memref<72x96xf32, #tpu.memory_space<vmem>>, %arg3: memref<16x96xf32, #tpu.memory_space<vmem>>) attributes {dimension_semantics = [#tpu.dimension_semantics<parallel>], iteration_bounds = array<i64: 1>, scalar_prefetch = 0 : i64, scratch_operands = 0 : i64, tpu.core_type = #tpu.core_type<tc>, window_params = [{transform_indices = @transform_0, window_bounds = array<i64: 16, 72>}, {pipeline_mode = #tpu.pipeline_mode<synchronous>, transform_indices = @transform_1, window_bounds = array<i64: 72, 96>}, {transform_indices = @transform_2, window_bounds = array<i64: 16, 96>}]} {
    %c0 = arith.constant 0 : index
    %c0_0 = arith.constant 0 : index
    %0 = vector.load %arg1[%c0, %c0_0] : memref<16x72xf32, #tpu.memory_space<vmem>>, vector<16x72xf32>
    %c0_1 = arith.constant 0 : index
    %c0_2 = arith.constant 0 : index
    %1 = vector.load %arg2[%c0_1, %c0_2] : memref<72x96xf32, #tpu.memory_space<vmem>>, vector<72x96xf32>
    %cst = arith.constant dense<0.000000e+00> : vector<16x96xf32>
    %2 = tpu.matmul %0, %1, %cst {dimension_numbers = #tpu.dot_dimension_numbers<[1], [0], [0], [1], [0, 0, 1, 1], [], []>} : vector<16x72xf32>, vector<72x96xf32>, vector<16x96xf32> -> vector<16x96xf32>
    %c0_3 = arith.constant 0 : index
    %c0_4 = arith.constant 0 : index
    %3 = vector.load %arg3[%c0_3, %c0_4] : memref<16x96xf32, #tpu.memory_space<vmem>>, vector<16x96xf32>
    tpu.vector_store %arg3[%c0_3, %c0_4], %2 {strides = array<i32>} : memref<16x96xf32, #tpu.memory_space<vmem>>, vector<16x96xf32>,
    return
  }
  func.func @transform_0(%arg0: i32) -> (i32, i32) {
    %c0_i32 = arith.constant 0 : i32
    %c0_i32_0 = arith.constant 0 : i32
    return %arg0, %c0_i32 : i32, i32
  }
  func.func @transform_1(%arg0: i32) -> (i32, i32) {
    %c0_i32 = arith.constant 0 : i32
    %c0_i32_0 = arith.constant 0 : i32
    %c0_i32_1 = arith.constant 0 : i32
    return %c0_i32, %c0_i32_0 : i32, i32
  }
  func.func @transform_2(%arg0: i32) -> (i32, i32) {
    %c0_i32 = arith.constant 0 : i32
    %c0_i32_0 = arith.constant 0 : i32
    return %arg0, %c0_i32 : i32, i32
  }
}

</mosaic_0001>

<bundles_post_ra>
// kernel: self_interaction_forward.1
= control target key start
LH: loop header
LB: loop body
LE: loop exit
PB: predicated region body
PF: predicated region fallthrough
CT: control target
= control target key end

     0   :  { %vm22_vm0 = vcmask 588800   ;;  %vm104_vm1 = vcmask 785408   ;;  %s201_s1 = inlined_call_operand.vmem [shape: f32[72,96], index: 1, kind: input, shape index: {}]   ;;  %s202_s0 = inlined_call_operand.vmem [shape: f32[16,72], index: 0, kind: input, shape index: {}]   ;;  %s203_s2 = inlined_call_operand.vmem [shape: f32[16,96], index: 2, kind: output, shape index: {}]  }
   0x1   :  { %v21_v0 = vld [vmem:[%s201_s1 + $0x40] sm:$0xff]  ;;  %v20_v1 = vld [vmem:[%s201_s1 + $0x38] sm:$0xff]  ;;  %v19_v2 = vld [vmem:[%s201_s1 + $0x30] sm:$0xff] }
   0x2   :  { %124 = vmatprep.subr.mxu0 %v21_v0  ;;  %v11_v3 = vld [vmem:[%s202_s0] sm:$0xff]  ;;  %v18_v4 = vld [vmem:[%s201_s1 + $0x28] sm:$0xff]  ;;  %v16_v6 = vld [vmem:[%s201_s1 + $0x18] sm:$0xff] }
   0x3   :  { %125 = vmatpush3.msra.mxu0 %v21_v0  ;;  %142 = vmatprep.mubr.msk.f32.mxu0 %vm22_vm0, %v11_v3  ;;  %v17_v5 = vld [vmem:[%s201_s1 + $0x20] sm:$0xff]  ;;  %v15_v7 = vld [vmem:[%s201_s1 + $0x10] sm:$0xff]  ;;  %v14_v8 = vld [vmem:[%s201_s1 + $0x8] sm:$0xff] }
   0x4   :  { %126 = vmatprep.subr.mxu0 %v20_v1  ;;  %v13_v9 = vld [vmem:[%s201_s1] sm:$0xff]  ;;  %v12_v10 = vld [vmem:[%s202_s0 + $0x8] sm:$0xff] }
   0x5   :  { %127 = vmatpush3.msra.mxu0 %v20_v1 }
   0x6   :  { %128 = vmatprep.subr.mxu0 %v19_v2 }
   0x7   :  { %129 = vmatpush3.msra.mxu0 %v19_v2 }
   0x8   :  { %130 = vmatprep.subr.mxu0 %v18_v4 }
   0x9   :  { %131 = vmatpush3.msra.mxu0 %v18_v4 }
   0xa   :  { %132 = vmatprep.subr.mxu0 %v17_v5 }
   0xb   :  { %133 = vmatpush3.msra.mxu0 %v17_v5 }
   0xc   :  { %134 = vmatprep.subr.mxu0 %v16_v6 }
   0xd   :  { %135 = vmatpush3.msra.mxu0 %v16_v6 }
   0xe   :  { %136 = vmatprep.subr.mxu0 %v15_v7 }
   0xf   :  { %137 = vmatpush3.msra.mxu0 %v15_v7 }
  0x10   :  { %138 = vmatprep.subr.mxu0 %v14_v8 }
  0x11   :  { %139 = vmatpush3.msra.mxu0 %v14_v8 }
  0x12   :  { %140 = vmatprep.subr.mxu0 %v13_v9 }
  0x13   :  { %141 = vmatpush3.msra.mxu0 %v13_v9 }
  0x14   :  { %143 = vmatmul.mubr.msk.f32.vlgmr.msra.gmra.mxu0 %vm22_vm0, %v12_v10 }
  0xd4   :  { %v144_v11 = vpop.f32.mrf.mxu0 }
  0xd5   :  { %106 = vst.msk [vmem:[%s203_s2 + $0x8] sm:$0xff] %vm104_vm1, %v144_v11 }
  0xd6   :  { %v95_v12 = vpop.f32.mrf.mxu0 }
  0xd7   :  { %105 = vst.msk [vmem:[%s203_s2] sm:$0xff] %vm104_vm1, %v95_v12 }

</bundles_post_ra>
